<compile_context>
chip_gen: v5e
topology: v5e:2x2
jax: 0.10.0
libtpu: 0.0.40
codegen_flags: <defaults>
</compile_context>

<pallas_src>
import numpy as np
import jax
import jax.numpy as jnp
from jax.experimental import pallas as pl
from jax.experimental.pallas import tpu as pltpu

# ----------------------------- synthetic task sizes -----------------------------
BS = 2                      # env batch
N_AGENTS = 3
B = BS * N_AGENTS           # flattened batch (bs * n_agents) = 6
N_ENEMIES = 4
N_ALLIES = N_AGENTS - 1     # 2
OWN_OBS_DIM = 10            # decomposer.own_obs_dim
NF_EN = 6                   # decomposer.obs_nf_en (before +1 attack bit)
NF_AL = 5                   # decomposer.obs_nf_al
N_ACT_NO_ATTACK = 6         # decomposer.n_actions_no_attack
ID_LENGTH = 4               # args.id_length
ENTITY_EMBED = 32           # args.entity_embed_dim
ATTN_EMBED = 16             # args.attn_embed_dim
TASK_REPRE = 8              # args.task_repre_dim
RNN_HIDDEN = 32             # args.rnn_hidden_dim

WRAPPED_OWN = OWN_OBS_DIM + ID_LENGTH + N_ACT_NO_ATTACK + 1      # 21
OBS_EN = NF_EN + 1                                               # 7
OBS_AL = NF_AL                                                   # 5
OBS_DIM = OWN_OBS_DIM + N_ENEMIES * NF_EN + N_ALLIES * NF_AL     # 44
LAST_ACTION = N_ACT_NO_ATTACK + N_ENEMIES                        # 10
INPUT_DIM = OBS_DIM + LAST_ACTION + ID_LENGTH                    # 58
N_Q = N_ACT_NO_ATTACK + N_ENEMIES                                # 10

BP = 8                                                           # batch padded to 8
R_ACT = BP + N_ALLIES * BP + N_ENEMIES * BP                      # 56 act-slab rows

# ------------------------------ lane / row layout ------------------------------
# Fused-output lane map (all intermediate results are 128-lane wide):
#   lanes  0:32  values / own_hidden / GRU r-gate
#   lanes 32:48  keys / query            (GRU z-gate uses 32:64)
#   lanes 48:54  wo-action head          (enemy_embed L1 uses 48:80)
#   lanes 64:96  attack hq / ee2a1 / wa2 (GRU n-gate x-part uses 64:96)
#   lanes 96:128 GRU n-gate h-part
L_TR = 32                       # task_repre lanes in the act slab's own rows

# Weight slab row blocks (each consumed as a full-lane row slice).
R_OWN, R_ALLY, R_ENEMY, R_GRU = 0, 128, 256, 384
R_HEADH, R_EE2A1 = 512, 544
W_ROWS = 576
B_ROWS = 8                      # bias slab rows (own, ally, enemy, gru, head, wa2, ba2, pad)


# --------------------------------- Pallas kernel ---------------------------------
def _sotax_kernel(act_ref, hin_ref, w_ref, b_ref, out_ref, h_scr):
    f32 = jnp.float32
    dot = lambda a, b: jnp.dot(a, b, preferred_element_type=f32)

    t = pl.program_id(0)

    @pl.when(t == 0)
    def _():
        h_scr[...] = hin_ref[...]

    hin = h_scr[...]                                     # [BP, H]

    own_row = act_ref[0:BP, :]                           # own @0:21, tr @32:40
    ally = act_ref[BP:BP + N_ALLIES * BP, :]             # [16, 128]
    enemy = act_ref[BP + N_ALLIES * BP:R_ACT, :]         # [32, 128]

    # Fused projections: one full-K matmul per activation group.
    own_fused = dot(own_row, w_ref[R_OWN:R_OWN + 128, :]) + b_ref[0:1, :]
    kv_al = dot(ally, w_ref[R_ALLY:R_ALLY + 128, :]) + b_ref[1:2, :]
    kv_en = dot(enemy, w_ref[R_ENEMY:R_ENEMY + 128, :]) + b_ref[2:3, :]

    query = own_fused[:, 32:48]                          # 1/sqrt(attn) folded host-side
    own_hidden = own_fused[:, 0:32]

    def attend(kv, n_ent):
        # Vectorized logits + softmax over entities (one max/exp/sum/div total).
        q_rep = jnp.broadcast_to(query[None], (n_ent, BP, ATTN_EMBED)
                                 ).reshape(n_ent * BP, ATTN_EMBED)
        lg = jnp.sum(q_rep * kv[:, 32:48], axis=-1, keepdims=True)   # [n*BP, 1]
        logits = jnp.concatenate([lg[e * BP:(e + 1) * BP, :]
                                  for e in range(n_ent)], axis=-1)   # [BP, n]
        m = jnp.max(logits, axis=-1, keepdims=True)
        p = jnp.exp(logits - m)
        s = jnp.sum(p, axis=-1, keepdims=True)
        probs = p / s
        out = probs[:, 0:1] * kv[0:BP, 0:32]
        for e in range(1, n_ent):
            out = out + probs[:, e:e + 1] * kv[e * BP:(e + 1) * BP, 0:32]
        return out                                                   # [BP, 32]

    ally_hidden = attend(kv_al, N_ALLIES)
    enemy_attn = attend(kv_en, N_ENEMIES)

    # ---- GRU cell: ONE 128x128 matmul gives all four gate pre-activations ----
    tot = jnp.concatenate([own_hidden, ally_hidden, enemy_attn, hin], axis=-1)
    g = dot(tot, w_ref[R_GRU:R_GRU + 128, :]) + b_ref[3:4, :]        # [BP, 128]
    r = jax.nn.sigmoid(g[:, 0:32])
    z = jax.nn.sigmoid(g[:, 32:64])
    n_g = jnp.tanh(g[:, 64:96] + r * g[:, 96:128])
    h = (1.0 - z) * n_g + z * hin                                    # [BP, H]
    h_scr[...] = h

    # ---- heads: h part of wo/attack in one dot, tr part already in own_fused ----
    head = dot(h, w_ref[R_HEADH:R_HEADH + RNN_HIDDEN, :]) + own_fused + b_ref[4:5, :]
    wo_q = head[:, 48:48 + N_ACT_NO_ATTACK]                          # [BP, 6]

    # attack head, batched over enemies; wee2 @ wa1e composed host-side
    ee = jnp.maximum(kv_en[:, 48:80], 0.0)                           # [4*BP, 32]
    x4 = dot(ee, w_ref[R_EE2A1:R_EE2A1 + RNN_HIDDEN, :])             # [4*BP, 128]
    hq_rep = jnp.broadcast_to(head[None], (N_ENEMIES, BP, 128)
                              ).reshape(N_ENEMIES * BP, 128)
    a1 = jnp.maximum(x4 + hq_rep, 0.0)
    att = jnp.sum(a1 * b_ref[5:6, :], axis=-1, keepdims=True) + b_ref[6:7, 0:1]

    # ---- single lane-dense 128-lane output store ----
    q10 = jnp.concatenate(
        [wo_q] + [att[e * BP:(e + 1) * BP, :] for e in range(N_ENEMIES)], axis=-1)
    out_ref[...] = jnp.concatenate(
        [q10, jnp.zeros((BP, 32 - N_Q), f32), h, jnp.zeros((BP, 64), f32)], axis=-1)


# --------------------------------- JAX glue ---------------------------------
def binary_embed(n, length):
    return np.array([(n >> (length - 1 - j)) & 1 for j in range(length)],
                    dtype=np.float32)


def preprocess(inputs):
    """Synthetic decomposer.  Works for [..., B, INPUT_DIM] (per-step or [T, B, ...])."""
    lead = inputs.shape[:-2]
    obs = inputs[..., :OBS_DIM]
    la = inputs[..., OBS_DIM:OBS_DIM + LAST_ACTION]

    own = obs[..., :OWN_OBS_DIM]
    enemy_raw = [obs[..., OWN_OBS_DIM + e * NF_EN: OWN_OBS_DIM + (e + 1) * NF_EN]
                 for e in range(N_ENEMIES)]
    ally_start = OWN_OBS_DIM + N_ENEMIES * NF_EN
    ally_raw = [obs[..., ally_start + a * NF_AL: ally_start + (a + 1) * NF_AL]
                for a in range(N_ALLIES)]

    ids = np.stack([binary_embed(i + 1, ID_LENGTH) for i in range(N_AGENTS)], axis=0)
    ids = jnp.asarray(np.tile(ids, (BS, 1)), jnp.float32)                # [B, id]
    ids = jnp.broadcast_to(ids, lead + (B, ID_LENGTH))

    no_attack = la[..., :N_ACT_NO_ATTACK]
    attack = la[..., N_ACT_NO_ATTACK:]                                   # [..., B, n_en]
    compact = jnp.concatenate([no_attack, attack.sum(-1, keepdims=True)], -1)

    own_w = jnp.concatenate([own, ids, compact], -1)                     # [..., B, 21]
    enemy_feats = jnp.stack(
        [jnp.concatenate([enemy_raw[e], attack[..., e:e + 1]], -1)
         for e in range(N_ENEMIES)], axis=-3)                            # [..., n_en, B, 7]
    ally_feats = jnp.stack(ally_raw, axis=-3)                            # [..., n_al, B, 5]
    return own_w, ally_feats, enemy_feats


def pack_params(params):
    """Pack all weights/biases into two tile-aligned, fusion-ready slabs."""
    (wq, bq, wka, bka, wva, bva, wke, bke, wve, bve, wown, bown,
     wir, wiz, win, whr, whz, whn, bir, biz, bin_, bhr, bhz, bhn,
     wwoh, wwot, bwo, wee1, bee1, wee2, bee2,
     wa1e, wa1h, wa1t, ba1, wa2, ba2) = params
    scale = 1.0 / float(np.sqrt(ATTN_EMBED))
    ee2a1 = wee2 @ wa1e                              # compose (no ReLU in between)

    w = jnp.zeros((W_ROWS, 128), jnp.float32)
    # OWN block: own obs rows 0:21, task_repre rows 32:40 (matches act-slab lanes).
    w = w.at[R_OWN:R_OWN + WRAPPED_OWN, 0:32].set(wown)
    w = w.at[R_OWN:R_OWN + WRAPPED_OWN, 32:48].set(wq * scale)
    w = w.at[R_OWN + L_TR:R_OWN + L_TR + TASK_REPRE, 48:48 + N_ACT_NO_ATTACK].set(wwot)
    w = w.at[R_OWN + L_TR:R_OWN + L_TR + TASK_REPRE, 64:96].set(wa1t)
    # ALLY block
    w = w.at[R_ALLY:R_ALLY + OBS_AL, 0:32].set(wva)
    w = w.at[R_ALLY:R_ALLY + OBS_AL, 32:48].set(wka)
    # ENEMY block
    w = w.at[R_ENEMY:R_ENEMY + OBS_EN, 0:32].set(wve)
    w = w.at[R_ENEMY:R_ENEMY + OBS_EN, 32:48].set(wke)
    w = w.at[R_ENEMY:R_ENEMY + OBS_EN, 48:80].set(wee1)
    # GRU block: rows 0:96 input (own|ally|enemy), rows 96:128 hidden
    w = w.at[R_GRU:R_GRU + 96, 0:32].set(wir)
    w = w.at[R_GRU:R_GRU + 96, 32:64].set(wiz)
    w = w.at[R_GRU:R_GRU + 96, 64:96].set(win)
    w = w.at[R_GRU + 96:R_GRU + 128, 0:32].set(whr)
    w = w.at[R_GRU + 96:R_GRU + 128, 32:64].set(whz)
    w = w.at[R_GRU + 96:R_GRU + 128, 96:128].set(whn)
    # HEAD (h part) block
    w = w.at[R_HEADH:R_HEADH + RNN_HIDDEN, 48:48 + N_ACT_NO_ATTACK].set(wwoh)
    w = w.at[R_HEADH:R_HEADH + RNN_HIDDEN, 64:96].set(wa1h)
    # enemy_embed L2 composed with attack L1 (enemy part)
    w = w.at[R_EE2A1:R_EE2A1 + RNN_HIDDEN, 64:96].set(ee2a1)

    b = jnp.zeros((B_ROWS, 128), jnp.float32)
    b = b.at[0:1, 0:32].set(bown)
    b = b.at[0:1, 32:48].set(bq * scale)
    b = b.at[1:2, 0:32].set(bva)
    b = b.at[1:2, 32:48].set(bka)
    b = b.at[2:3, 0:32].set(bve)
    b = b.at[2:3, 32:48].set(bke)
    b = b.at[2:3, 48:80].set(bee1)
    b = b.at[3:4, 0:32].set(bir + bhr)
    b = b.at[3:4, 32:64].set(biz + bhz)
    b = b.at[3:4, 64:96].set(bin_)
    b = b.at[3:4, 96:128].set(bhn)
    b = b.at[4:5, 48:48 + N_ACT_NO_ATTACK].set(bwo)
    b = b.at[4:5, 64:96].set(ba1 + bee2 @ wa1e)
    b = b.at[5:6, 64:96].set(wa2.T)                  # wa2 as a broadcast row
    b = b.at[6:7, 0:1].set(ba2)
    return w, b


@jax.jit
def sotax_forward_seq(wslab, bslab, inputs_seq, hidden_state, task_repre):
    """T sequential forward steps (identical semantics to calling the module T times)."""
    T = inputs_seq.shape[0]
    own_w, ally_f, enemy_f = preprocess(inputs_seq)
    pad_b = BP - B

    own_p = jnp.pad(own_w, ((0, 0), (0, pad_b), (0, 0)))                   # [T,BP,21]
    ally_p = jnp.pad(ally_f, ((0, 0), (0, 0), (0, pad_b), (0, 0))
                     ).reshape(T, N_ALLIES * BP, OBS_AL)
    enemy_p = jnp.pad(enemy_f, ((0, 0), (0, 0), (0, pad_b), (0, 0))
                      ).reshape(T, N_ENEMIES * BP, OBS_EN)
    tr_p = jnp.pad(task_repre, ((0, pad_b), (0, 0)))
    tr_seq = jnp.broadcast_to(tr_p[None], (T, BP, TASK_REPRE))
    hin_p = jnp.pad(hidden_state.reshape(-1, RNN_HIDDEN), ((0, pad_b), (0, 0)))

    # One lane-padded activation slab per step (3 operands + h_init total).
    act = jnp.zeros((T, R_ACT, 128), jnp.float32)
    act = act.at[:, 0:BP, 0:WRAPPED_OWN].set(own_p)
    act = act.at[:, 0:BP, L_TR:L_TR + TASK_REPRE].set(tr_seq)
    act = act.at[:, BP:BP + N_ALLIES * BP, 0:OBS_AL].set(ally_p)
    act = act.at[:, BP + N_ALLIES * BP:R_ACT, 0:OBS_EN].set(enemy_p)

    out = pl.pallas_call(
        _sotax_kernel,
        out_shape=jax.ShapeDtypeStruct((T, BP, 128), jnp.float32),
        grid_spec=pltpu.PrefetchScalarGridSpec(
            num_scalar_prefetch=0,
            grid=(T,),
            in_specs=[
                pl.BlockSpec((None, R_ACT, 128), lambda t: (t, 0, 0)),   # per-step acts
                pl.BlockSpec((BP, RNN_HIDDEN), lambda t: (0, 0)),        # h init (once)
                pl.BlockSpec((W_ROWS, 128), lambda t: (0, 0)),           # weights (resident)
                pl.BlockSpec((B_ROWS, 128), lambda t: (0, 0)),           # biases (resident)
            ],
            out_specs=pl.BlockSpec((None, BP, 128), lambda t: (t, 0, 0)),
            scratch_shapes=[pltpu.VMEM((BP, RNN_HIDDEN), jnp.float32)],  # carried h
        ),
        compiler_params=pltpu.CompilerParams(dimension_semantics=("arbitrary",)),
    )(act, hin_p, wslab, bslab)

    q_seq = out[:, :B, 0:N_Q]
    h_seq = out[:, :B, 32:32 + RNN_HIDDEN]
    return q_seq, h_seq


def sotax_forward(wslab, bslab, inputs, hidden_state, task_repre):
    """Single-step forward (original module signature)."""
    q, h = sotax_forward_seq(wslab, bslab, inputs[None], hidden_state, task_repre)
    return q[0], h[0]


# ------------------------------ pure-JAX reference ------------------------------
def sotax_reference(params, inputs, hidden_state, task_repre):
    (wq, bq, wka, bka, wva, bva, wke, bke, wve, bve, wown, bown,
     wir, wiz, win, whr, whz, whn, bir, biz, bin_, bhr, bhz, bhn,
     wwoh, wwot, bwo, wee1, bee1, wee2, bee2,
     wa1e, wa1h, wa1t, ba1, wa2, ba2) = params
    own_w, ally_feats, enemy_feats = preprocess(inputs)
    hin = hidden_state.reshape(-1, RNN_HIDDEN)

    query = own_w @ wq + bq
    own_hidden = own_w @ wown + bown

    def attn(feats, wk, bk, wv, bv):
        keys = jnp.einsum('ebd,da->eba', feats, wk) + bk
        vals = jnp.einsum('ebd,dv->ebv', feats, wv) + bv
        energy = jnp.einsum('ba,eba->be', query / jnp.sqrt(ATTN_EMBED * 1.0), keys)
        score = jax.nn.softmax(energy, axis=-1)
        return jnp.einsum('be,ebv->bv', score, vals)

    ally_hidden = attn(ally_feats, wka, bka, wva, bva)
    enemy_hidden = attn(enemy_feats, wke, bke, wve, bve)
    tot = jnp.concatenate([own_hidden, ally_hidden, enemy_hidden], -1)

    r = jax.nn.sigmoid(tot @ wir + bir + hin @ whr + bhr)
    z = jax.nn.sigmoid(tot @ wiz + biz + hin @ whz + bhz)
    n = jnp.tanh(tot @ win + bin_ + r * (hin @ whn + bhn))
    h = (1.0 - z) * n + z * hin

    wo_q = h @ wwoh + task_repre @ wwot + bwo
    eh = jnp.maximum(jnp.einsum('ebd,dh->ebh', enemy_feats, wee1) + bee1, 0.0) @ wee2 + bee2
    hq = h @ wa1h + task_repre @ wa1t + ba1
    a1 = jnp.maximum(jnp.einsum('ebh,hk->ebk', eh, wa1e) + hq[None], 0.0)
    aq = (jnp.einsum('ebh,ho->ebo', a1, wa2) + ba2)[..., 0].T
    return jnp.concatenate([wo_q, aq], -1), h


# ------------------------------ deterministic params ------------------------------
def init_params(key):
    keys = iter(jax.random.split(key, 64))

    def w(shape, scale=0.1):
        return jax.random.normal(next(keys), shape, jnp.float32) * scale

    H, E, A, T = RNN_HIDDEN, ENTITY_EMBED, ATTN_EMBED, TASK_REPRE
    return (
        w((WRAPPED_OWN, A)), w((1, A)),                     # query
        w((OBS_AL, A)), w((1, A)),                          # ally_key
        w((OBS_AL, E)), w((1, E)),                          # ally_value
        w((OBS_EN, A)), w((1, A)),                          # enemy_key
        w((OBS_EN, E)), w((1, E)),                          # enemy_value
        w((WRAPPED_OWN, E)), w((1, E)),                     # own_value
        w((3 * E, H)), w((3 * E, H)), w((3 * E, H)),        # GRU W_ir, W_iz, W_in
        w((H, H)), w((H, H)), w((H, H)),                    # GRU W_hr, W_hz, W_hn
        w((1, H)), w((1, H)), w((1, H)),                    # GRU b_ir, b_iz, b_in
        w((1, H)), w((1, H)), w((1, H)),                    # GRU b_hr, b_hz, b_hn
        w((H, N_ACT_NO_ATTACK)), w((T, N_ACT_NO_ATTACK)), w((1, N_ACT_NO_ATTACK)),  # wo head
        w((OBS_EN, H)), w((1, H)), w((H, H)), w((1, H)),    # enemy_embed
        w((H, H)), w((H, H)), w((T, H)), w((1, H)),         # attack layer 1 (split)
        w((H, 1)), w((1, 1)),                               # attack layer 2
    )


# ------------------------------------ main ------------------------------------
if __name__ == "__main__":
    key = jax.random.PRNGKey(0)
    kp, ki, ka, kt = jax.random.split(key, 4)

    params = init_params(kp)
    wslab, bslab = pack_params(params)

    T_STEPS = 5
    inputs_seq = jax.random.normal(ki, (T_STEPS, B, INPUT_DIM), jnp.float32)
    la_idx = jax.random.randint(ka, (T_STEPS, B), 0, LAST_ACTION)
    last_action = jax.nn.one_hot(la_idx, LAST_ACTION, dtype=jnp.float32)
    inputs_seq = inputs_seq.at[..., OBS_DIM:OBS_DIM + LAST_ACTION].set(last_action)

    hidden = jnp.zeros((B, RNN_HIDDEN), jnp.float32)        # init_hidden, expanded
    task_repre = jax.random.normal(kt, (B, TASK_REPRE), jnp.float32)

    q_seq, h_seq = sotax_forward_seq(wslab, bslab, inputs_seq, hidden, task_repre)
    q_seq = jax.block_until_ready(q_seq)
    h_seq = jax.block_until_ready(h_seq)
    assert q_seq.shape == (T_STEPS, B, N_Q) and h_seq.shape == (T_STEPS, B, RNN_HIDDEN)

    # Reference: the original per-step forward applied sequentially.
    h_ref = hidden
    for t in range(T_STEPS):
        q_ref, h_ref = sotax_reference(params, inputs_seq[t], h_ref, task_repre)
        assert jnp.allclose(q_seq[t], q_ref, atol=1e-4, rtol=1e-4), f"q mismatch at t={t}"
        assert jnp.allclose(h_seq[t], h_ref, atol=1e-4, rtol=1e-4), f"h mismatch at t={t}"

    print("KERNEL_OK")
</pallas_src>

<mosaic_0001>
module attributes {stable_mosaic.version = 11 : i64} {
  func.func @_sotax_kernel(%arg0: i32, %arg1: memref<1x56x128xf32, #tpu.memory_space<vmem>>, %arg2: memref<8x32xf32, #tpu.memory_space<vmem>>, %arg3: memref<576x128xf32, #tpu.memory_space<vmem>>, %arg4: memref<8x128xf32, #tpu.memory_space<vmem>>, %arg5: memref<1x8x128xf32, #tpu.memory_space<vmem>>, %arg6: memref<8x32xf32, #tpu.memory_space<vmem>>) attributes {dimension_semantics = [#tpu.dimension_semantics<arbitrary>], iteration_bounds = array<i64: 5>, scalar_prefetch = 0 : i64, scratch_operands = 1 : i64, tpu.core_type = #tpu.core_type<tc>, window_params = [{transform_indices = @transform_0, window_bounds = array<i64: 1, 56, 128>}, {pipeline_mode = #tpu.pipeline_mode<synchronous>, transform_indices = @transform_1, window_bounds = array<i64: 8, 32>}, {pipeline_mode = #tpu.pipeline_mode<synchronous>, transform_indices = @transform_2, window_bounds = array<i64: 576, 128>}, {pipeline_mode = #tpu.pipeline_mode<synchronous>, transform_indices = @transform_3, window_bounds = array<i64: 8, 128>}, {transform_indices = @transform_4, window_bounds = array<i64: 1, 8, 128>}]} {
    %c0_i32 = arith.constant 0 : i32
    %0 = arith.cmpi eq, %arg0, %c0_i32 : i32
    %1 = arith.extui %0 : i1 to i32
    %c0_i32_0 = arith.constant 0 : i32
    %2 = arith.cmpi ne, %1, %c0_i32_0 : i32
    scf.if %2 {
      %c0_48 = arith.constant 0 : index
      %c0_49 = arith.constant 0 : index
      %164 = vector.load %arg2[%c0_48, %c0_49] : memref<8x32xf32, #tpu.memory_space<vmem>>, vector<8x32xf32>
      %c0_50 = arith.constant 0 : index
      %c0_51 = arith.constant 0 : index
      %165 = vector.load %arg6[%c0_50, %c0_51] : memref<8x32xf32, #tpu.memory_space<vmem>>, vector<8x32xf32>
      tpu.vector_store %arg6[%c0_50, %c0_51], %164 {strides = array<i32>} : memref<8x32xf32, #tpu.memory_space<vmem>>, vector<8x32xf32>,
    } else {
    }
    %c0 = arith.constant 0 : index
    %c0_1 = arith.constant 0 : index
    %3 = vector.load %arg6[%c0, %c0_1] : memref<8x32xf32, #tpu.memory_space<vmem>>, vector<8x32xf32>
    %c0_2 = arith.constant 0 : index
    %c0_3 = arith.constant 0 : index
    %c0_4 = arith.constant 0 : index
    %4 = vector.load %arg1[%c0_2, %c0_3, %c0_4] : memref<1x56x128xf32, #tpu.memory_space<vmem>>, vector<1x8x128xf32>
    %5 = vector.shape_cast %4 : vector<1x8x128xf32> to vector<8x128xf32>
    %c0_5 = arith.constant 0 : index
    %c8 = arith.constant 8 : index
    %c0_6 = arith.constant 0 : index
    %6 = vector.load %arg1[%c0_5, %c8, %c0_6] : memref<1x56x128xf32, #tpu.memory_space<vmem>>, vector<1x16x128xf32>
    %7 = vector.shape_cast %6 : vector<1x16x128xf32> to vector<16x128xf32>
    %c0_7 = arith.constant 0 : index
    %c24 = arith.constant 24 : index
    %c0_8 = arith.constant 0 : index
    %8 = vector.load %arg1[%c0_7, %c24, %c0_8] : memref<1x56x128xf32, #tpu.memory_space<vmem>>, vector<1x32x128xf32>
    %9 = vector.shape_cast %8 : vector<1x32x128xf32> to vector<32x128xf32>
    %c0_9 = arith.constant 0 : index
    %c0_10 = arith.constant 0 : index
    %10 = vector.load %arg3[%c0_9, %c0_10] : memref<576x128xf32, #tpu.memory_space<vmem>>, vector<128x128xf32>
    %cst = arith.constant dense<0.000000e+00> : vector<8x128xf32>
    %11 = tpu.matmul %5, %10, %cst {dimension_numbers = #tpu.dot_dimension_numbers<[1], [0], [0], [1], [0, 0, 1, 1], [], []>} : vector<8x128xf32>, vector<128x128xf32>, vector<8x128xf32> -> vector<8x128xf32>
    %c0_11 = arith.constant 0 : index
    %c0_12 = arith.constant 0 : index
    %12 = vector.load %arg4[%c0_11, %c0_12] : memref<8x128xf32, #tpu.memory_space<vmem>>, vector<1x128xf32>
    %13 = vector.broadcast %12 : vector<1x128xf32> to vector<8x128xf32>
    %14 = arith.addf %11, %13 : vector<8x128xf32>
    %c128 = arith.constant 128 : index
    %c0_13 = arith.constant 0 : index
    %15 = vector.load %arg3[%c128, %c0_13] : memref<576x128xf32, #tpu.memory_space<vmem>>, vector<128x128xf32>
    %cst_14 = arith.constant dense<0.000000e+00> : vector<16x128xf32>
    %16 = tpu.matmul %7, %15, %cst_14 {dimension_numbers = #tpu.dot_dimension_numbers<[1], [0], [0], [1], [0, 0, 1, 1], [], []>} : vector<16x128xf32>, vector<128x128xf32>, vector<16x128xf32> -> vector<16x128xf32>
    %c1 = arith.constant 1 : index
    %c0_15 = arith.constant 0 : index
    %17 = vector.load %arg4[%c1, %c0_15] : memref<8x128xf32, #tpu.memory_space<vmem>>, vector<1x128xf32>
    %18 = vector.broadcast %17 : vector<1x128xf32> to vector<16x128xf32>
    %19 = arith.addf %16, %18 : vector<16x128xf32>
    %c256 = arith.constant 256 : index
    %c0_16 = arith.constant 0 : index
    %20 = vector.load %arg3[%c256, %c0_16] : memref<576x128xf32, #tpu.memory_space<vmem>>, vector<128x128xf32>
    %cst_17 = arith.constant dense<0.000000e+00> : vector<32x128xf32>
    %21 = tpu.matmul %9, %20, %cst_17 {dimension_numbers = #tpu.dot_dimension_numbers<[1], [0], [0], [1], [0, 0, 1, 1], [], []>} : vector<32x128xf32>, vector<128x128xf32>, vector<32x128xf32> -> vector<32x128xf32>
    %c2 = arith.constant 2 : index
    %c0_18 = arith.constant 0 : index
    %22 = vector.load %arg4[%c2, %c0_18] : memref<8x128xf32, #tpu.memory_space<vmem>>, vector<1x128xf32>
    %23 = vector.broadcast %22 : vector<1x128xf32> to vector<32x128xf32>
    %24 = arith.addf %21, %23 : vector<32x128xf32>
    %25 = vector.extract_strided_slice %14 {offsets = [0, 32], sizes = [8, 16], strides = [1, 1]} : vector<8x128xf32> to vector<8x16xf32>
    %26 = vector.extract_strided_slice %14 {offsets = [0, 0], sizes = [8, 32], strides = [1, 1]} : vector<8x128xf32> to vector<8x32xf32>
    %27 = vector.shape_cast %25 : vector<8x16xf32> to vector<1x8x16xf32>
    %28 = vector.shape_cast %27 : vector<1x8x16xf32> to vector<1x8x16xf32>
    %29 = vector.broadcast %28 : vector<1x8x16xf32> to vector<2x8x16xf32>
    %30 = vector.shape_cast %29 : vector<2x8x16xf32> to vector<16x16xf32>
    %31 = vector.extract_strided_slice %19 {offsets = [0, 32], sizes = [16, 16], strides = [1, 1]} : vector<16x128xf32> to vector<16x16xf32>
    %32 = arith.mulf %30, %31 : vector<16x16xf32>
    %cst_19 = arith.constant dense<0.000000e+00> : vector<16xf32>
    %33 = vector.multi_reduction <add>, %32, %cst_19 [1] : vector<16x16xf32> to vector<16xf32>
    %34 = vector.shape_cast %33 : vector<16xf32> to vector<16x1xf32>
    %35 = vector.extract_strided_slice %34 {offsets = [0, 0], sizes = [8, 1], strides = [1, 1]} : vector<16x1xf32> to vector<8x1xf32>
    %36 = vector.extract_strided_slice %34 {offsets = [8, 0], sizes = [8, 1], strides = [1, 1]} : vector<16x1xf32> to vector<8x1xf32>
    %37 = tpu.concatenate %35, %36 in 1 : vector<8x1xf32>, vector<8x1xf32> -> vector<8x2xf32>
    %cst_20 = arith.constant dense<0xFF800000> : vector<8xf32>
    %38 = vector.multi_reduction <maximumf>, %37, %cst_20 [1] : vector<8x2xf32> to vector<8xf32>
    %39 = vector.shape_cast %38 : vector<8xf32> to vector<8x1xf32>
    %40 = vector.broadcast %39 : vector<8x1xf32> to vector<8x2xf32>
    %41 = arith.subf %37, %40 : vector<8x2xf32>
    %42 = math.exp %41 : vector<8x2xf32>
    %cst_21 = arith.constant dense<0.000000e+00> : vector<8xf32>
    %43 = vector.multi_reduction <add>, %42, %cst_21 [1] : vector<8x2xf32> to vector<8xf32>
    %44 = vector.shape_cast %43 : vector<8xf32> to vector<8x1xf32>
    %45 = vector.broadcast %44 : vector<8x1xf32> to vector<8x2xf32>
    %46 = arith.divf %42, %45 : vector<8x2xf32>
    %47 = vector.extract_strided_slice %46 {offsets = [0, 0], sizes = [8, 1], strides = [1, 1]} : vector<8x2xf32> to vector<8x1xf32>
    %48 = vector.extract_strided_slice %19 {offsets = [0, 0], sizes = [8, 32], strides = [1, 1]} : vector<16x128xf32> to vector<8x32xf32>
    %49 = vector.broadcast %47 : vector<8x1xf32> to vector<8x32xf32>
    %50 = arith.mulf %49, %48 : vector<8x32xf32>
    %51 = vector.extract_strided_slice %46 {offsets = [0, 1], sizes = [8, 1], strides = [1, 1]} : vector<8x2xf32> to vector<8x1xf32>
    %52 = vector.extract_strided_slice %19 {offsets = [8, 0], sizes = [8, 32], strides = [1, 1]} : vector<16x128xf32> to vector<8x32xf32>
    %53 = vector.broadcast %51 : vector<8x1xf32> to vector<8x32xf32>
    %54 = arith.mulf %53, %52 : vector<8x32xf32>
    %55 = arith.addf %50, %54 : vector<8x32xf32>
    %56 = vector.shape_cast %25 : vector<8x16xf32> to vector<1x8x16xf32>
    %57 = vector.shape_cast %56 : vector<1x8x16xf32> to vector<1x8x16xf32>
    %58 = vector.broadcast %57 : vector<1x8x16xf32> to vector<4x8x16xf32>
    %59 = vector.shape_cast %58 : vector<4x8x16xf32> to vector<32x16xf32>
    %60 = vector.extract_strided_slice %24 {offsets = [0, 32], sizes = [32, 16], strides = [1, 1]} : vector<32x128xf32> to vector<32x16xf32>
    %61 = arith.mulf %59, %60 : vector<32x16xf32>
    %cst_22 = arith.constant dense<0.000000e+00> : vector<32xf32>
    %62 = vector.multi_reduction <add>, %61, %cst_22 [1] : vector<32x16xf32> to vector<32xf32>
    %63 = vector.shape_cast %62 : vector<32xf32> to vector<32x1xf32>
    %64 = vector.extract_strided_slice %63 {offsets = [0, 0], sizes = [8, 1], strides = [1, 1]} : vector<32x1xf32> to vector<8x1xf32>
    %65 = vector.extract_strided_slice %63 {offsets = [8, 0], sizes = [8, 1], strides = [1, 1]} : vector<32x1xf32> to vector<8x1xf32>
    %66 = vector.extract_strided_slice %63 {offsets = [16, 0], sizes = [8, 1], strides = [1, 1]} : vector<32x1xf32> to vector<8x1xf32>
    %67 = vector.extract_strided_slice %63 {offsets = [24, 0], sizes = [8, 1], strides = [1, 1]} : vector<32x1xf32> to vector<8x1xf32>
    %68 = tpu.concatenate %64, %65, %66, %67 in 1 : vector<8x1xf32>, vector<8x1xf32>, vector<8x1xf32>, vector<8x1xf32> -> vector<8x4xf32>
    %cst_23 = arith.constant dense<0xFF800000> : vector<8xf32>
    %69 = vector.multi_reduction <maximumf>, %68, %cst_23 [1] : vector<8x4xf32> to vector<8xf32>
    %70 = vector.shape_cast %69 : vector<8xf32> to vector<8x1xf32>
    %71 = vector.broadcast %70 : vector<8x1xf32> to vector<8x4xf32>
    %72 = arith.subf %68, %71 : vector<8x4xf32>
    %73 = math.exp %72 : vector<8x4xf32>
    %cst_24 = arith.constant dense<0.000000e+00> : vector<8xf32>
    %74 = vector.multi_reduction <add>, %73, %cst_24 [1] : vector<8x4xf32> to vector<8xf32>
    %75 = vector.shape_cast %74 : vector<8xf32> to vector<8x1xf32>
    %76 = vector.broadcast %75 : vector<8x1xf32> to vector<8x4xf32>
    %77 = arith.divf %73, %76 : vector<8x4xf32>
    %78 = vector.extract_strided_slice %77 {offsets = [0, 0], sizes = [8, 1], strides = [1, 1]} : vector<8x4xf32> to vector<8x1xf32>
    %79 = vector.extract_strided_slice %24 {offsets = [0, 0], sizes = [8, 32], strides = [1, 1]} : vector<32x128xf32> to vector<8x32xf32>
    %80 = vector.broadcast %78 : vector<8x1xf32> to vector<8x32xf32>
    %81 = arith.mulf %80, %79 : vector<8x32xf32>
    %82 = vector.extract_strided_slice %77 {offsets = [0, 1], sizes = [8, 1], strides = [1, 1]} : vector<8x4xf32> to vector<8x1xf32>
    %83 = vector.extract_strided_slice %24 {offsets = [8, 0], sizes = [8, 32], strides = [1, 1]} : vector<32x128xf32> to vector<8x32xf32>
    %84 = vector.broadcast %82 : vector<8x1xf32> to vector<8x32xf32>
    %85 = arith.mulf %84, %83 : vector<8x32xf32>
    %86 = arith.addf %81, %85 : vector<8x32xf32>
    %87 = vector.extract_strided_slice %77 {offsets = [0, 2], sizes = [8, 1], strides = [1, 1]} : vector<8x4xf32> to vector<8x1xf32>
    %88 = vector.extract_strided_slice %24 {offsets = [16, 0], sizes = [8, 32], strides = [1, 1]} : vector<32x128xf32> to vector<8x32xf32>
    %89 = vector.broadcast %87 : vector<8x1xf32> to vector<8x32xf32>
    %90 = arith.mulf %89, %88 : vector<8x32xf32>
    %91 = arith.addf %86, %90 : vector<8x32xf32>
    %92 = vector.extract_strided_slice %77 {offsets = [0, 3], sizes = [8, 1], strides = [1, 1]} : vector<8x4xf32> to vector<8x1xf32>
    %93 = vector.extract_strided_slice %24 {offsets = [24, 0], sizes = [8, 32], strides = [1, 1]} : vector<32x128xf32> to vector<8x32xf32>
    %94 = vector.broadcast %92 : vector<8x1xf32> to vector<8x32xf32>
    %95 = arith.mulf %94, %93 : vector<8x32xf32>
    %96 = arith.addf %91, %95 : vector<8x32xf32>
    %97 = tpu.concatenate %26, %55, %96, %3 in 1 : vector<8x32xf32>, vector<8x32xf32>, vector<8x32xf32>, vector<8x32xf32> -> vector<8x128xf32>
    %c384 = arith.constant 384 : index
    %c0_25 = arith.constant 0 : index
    %98 = vector.load %arg3[%c384, %c0_25] : memref<576x128xf32, #tpu.memory_space<vmem>>, vector<128x128xf32>
    %cst_26 = arith.constant dense<0.000000e+00> : vector<8x128xf32>
    %99 = tpu.matmul %97, %98, %cst_26 {dimension_numbers = #tpu.dot_dimension_numbers<[1], [0], [0], [1], [0, 0, 1, 1], [], []>} : vector<8x128xf32>, vector<128x128xf32>, vector<8x128xf32> -> vector<8x128xf32>
    %c3 = arith.constant 3 : index
    %c0_27 = arith.constant 0 : index
    %100 = vector.load %arg4[%c3, %c0_27] : memref<8x128xf32, #tpu.memory_space<vmem>>, vector<1x128xf32>
    %101 = vector.broadcast %100 : vector<1x128xf32> to vector<8x128xf32>
    %102 = arith.addf %99, %101 : vector<8x128xf32>
    %103 = vector.extract_strided_slice %102 {offsets = [0, 0], sizes = [8, 32], strides = [1, 1]} : vector<8x128xf32> to vector<8x32xf32>
    %104 = arith.negf %103 : vector<8x32xf32>
    %105 = math.exp %104 : vector<8x32xf32>
    %cst_28 = arith.constant 1.000000e+00 : f32
    %106 = vector.broadcast %cst_28 : f32 to vector<8x32xf32>
    %107 = arith.addf %106, %105 : vector<8x32xf32>
    %108 = arith.divf %106, %107 : vector<8x32xf32>
    %109 = vector.extract_strided_slice %102 {offsets = [0, 32], sizes = [8, 32], strides = [1, 1]} : vector<8x128xf32> to vector<8x32xf32>
    %110 = arith.negf %109 : vector<8x32xf32>
    %111 = math.exp %110 : vector<8x32xf32>
    %cst_29 = arith.constant 1.000000e+00 : f32
    %112 = vector.broadcast %cst_29 : f32 to vector<8x32xf32>
    %113 = arith.addf %112, %111 : vector<8x32xf32>
    %114 = arith.divf %112, %113 : vector<8x32xf32>
    %115 = vector.extract_strided_slice %102 {offsets = [0, 64], sizes = [8, 32], strides = [1, 1]} : vector<8x128xf32> to vector<8x32xf32>
    %116 = vector.extract_strided_slice %102 {offsets = [0, 96], sizes = [8, 32], strides = [1, 1]} : vector<8x128xf32> to vector<8x32xf32>
    %117 = arith.mulf %108, %116 : vector<8x32xf32>
    %118 = arith.addf %115, %117 : vector<8x32xf32>
    %119 = math.tanh %118 : vector<8x32xf32>
    %cst_30 = arith.constant 1.000000e+00 : f32
    %120 = vector.broadcast %cst_30 : f32 to vector<8x32xf32>
    %121 = arith.subf %120, %114 : vector<8x32xf32>
    %122 = arith.mulf %121, %119 : vector<8x32xf32>
    %123 = arith.mulf %114, %3 : vector<8x32xf32>
    %124 = arith.addf %122, %123 : vector<8x32xf32>
    %c0_31 = arith.constant 0 : index
    %c0_32 = arith.constant 0 : index
    %125 = vector.load %arg6[%c0_31, %c0_32] : memref<8x32xf32, #tpu.memory_space<vmem>>, vector<8x32xf32>
    tpu.vector_store %arg6[%c0_31, %c0_32], %124 {strides = array<i32>} : memref<8x32xf32, #tpu.memory_space<vmem>>, vector<8x32xf32>,
    %c512 = arith.constant 512 : index
    %c0_33 = arith.constant 0 : index
    %126 = vector.load %arg3[%c512, %c0_33] : memref<576x128xf32, #tpu.memory_space<vmem>>, vector<32x128xf32>
    %cst_34 = arith.constant dense<0.000000e+00> : vector<8x128xf32>
    %127 = tpu.matmul %124, %126, %cst_34 {dimension_numbers = #tpu.dot_dimension_numbers<[1], [0], [0], [1], [0, 0, 1, 1], [], []>} : vector<8x32xf32>, vector<32x128xf32>, vector<8x128xf32> -> vector<8x128xf32>
    %128 = arith.addf %127, %14 : vector<8x128xf32>
    %c4 = arith.constant 4 : index
    %c0_35 = arith.constant 0 : index
    %129 = vector.load %arg4[%c4, %c0_35] : memref<8x128xf32, #tpu.memory_space<vmem>>, vector<1x128xf32>
    %130 = vector.broadcast %129 : vector<1x128xf32> to vector<8x128xf32>
    %131 = arith.addf %128, %130 : vector<8x128xf32>
    %132 = vector.extract_strided_slice %131 {offsets = [0, 48], sizes = [8, 6], strides = [1, 1]} : vector<8x128xf32> to vector<8x6xf32>
    %133 = vector.extract_strided_slice %24 {offsets = [0, 48], sizes = [32, 32], strides = [1, 1]} : vector<32x128xf32> to vector<32x32xf32>
    %cst_36 = arith.constant 0.000000e+00 : f32
    %134 = vector.broadcast %cst_36 : f32 to vector<32x32xf32>
    %135 = arith.maximumf %133, %134 : vector<32x32xf32>
    %c544 = arith.constant 544 : index
    %c0_37 = arith.constant 0 : index
    %136 = vector.load %arg3[%c544, %c0_37] : memref<576x128xf32, #tpu.memory_space<vmem>>, vector<32x128xf32>
    %cst_38 = arith.constant dense<0.000000e+00> : vector<32x128xf32>
    %137 = tpu.matmul %135, %136, %cst_38 {dimension_numbers = #tpu.dot_dimension_numbers<[1], [0], [0], [1], [0, 0, 1, 1], [], []>} : vector<32x32xf32>, vector<32x128xf32>, vector<32x128xf32> -> vector<32x128xf32>
    %138 = vector.shape_cast %131 : vector<8x128xf32> to vector<1x8x128xf32>
    %139 = vector.shape_cast %138 : vector<1x8x128xf32> to vector<1x8x128xf32>
    %140 = vector.broadcast %139 : vector<1x8x128xf32> to vector<4x8x128xf32>
    %141 = vector.shape_cast %140 : vector<4x8x128xf32> to vector<32x128xf32>
    %142 = arith.addf %137, %141 : vector<32x128xf32>
    %cst_39 = arith.constant 0.000000e+00 : f32
    %143 = vector.broadcast %cst_39 : f32 to vector<32x128xf32>
    %144 = arith.maximumf %142, %143 : vector<32x128xf32>
    %c5 = arith.constant 5 : index
    %c0_40 = arith.constant 0 : index
    %145 = vector.load %arg4[%c5, %c0_40] : memref<8x128xf32, #tpu.memory_space<vmem>>, vector<1x128xf32>
    %146 = vector.broadcast %145 : vector<1x128xf32> to vector<32x128xf32>
    %147 = arith.mulf %144, %146 : vector<32x128xf32>
    %cst_41 = arith.constant dense<0.000000e+00> : vector<32xf32>
    %148 = vector.multi_reduction <add>, %147, %cst_41 [1] : vector<32x128xf32> to vector<32xf32>
    %149 = vector.shape_cast %148 : vector<32xf32> to vector<32x1xf32>
    %c6 = arith.constant 6 : index
    %c0_42 = arith.constant 0 : index
    %150 = vector.load %arg4[%c6, %c0_42] : memref<8x128xf32, #tpu.memory_space<vmem>>, vector<1x1xf32>
    %151 = vector.broadcast %150 : vector<1x1xf32> to vector<32x1xf32>
    %152 = arith.addf %149, %151 : vector<32x1xf32>
    %153 = vector.extract_strided_slice %152 {offsets = [0, 0], sizes = [8, 1], strides = [1, 1]} : vector<32x1xf32> to vector<8x1xf32>
    %154 = vector.extract_strided_slice %152 {offsets = [8, 0], sizes = [8, 1], strides = [1, 1]} : vector<32x1xf32> to vector<8x1xf32>
    %155 = vector.extract_strided_slice %152 {offsets = [16, 0], sizes = [8, 1], strides = [1, 1]} : vector<32x1xf32> to vector<8x1xf32>
    %156 = vector.extract_strided_slice %152 {offsets = [24, 0], sizes = [8, 1], strides = [1, 1]} : vector<32x1xf32> to vector<8x1xf32>
    %157 = tpu.concatenate %132, %153, %154, %155, %156 in 1 : vector<8x6xf32>, vector<8x1xf32>, vector<8x1xf32>, vector<8x1xf32>, vector<8x1xf32> -> vector<8x10xf32>
    %cst_43 = arith.constant 0.000000e+00 : f32
    %158 = vector.broadcast %cst_43 : f32 to vector<8x22xf32>
    %cst_44 = arith.constant 0.000000e+00 : f32
    %159 = vector.broadcast %cst_44 : f32 to vector<8x64xf32>
    %160 = tpu.concatenate %157, %158, %124, %159 in 1 : vector<8x10xf32>, vector<8x22xf32>, vector<8x32xf32>, vector<8x64xf32> -> vector<8x128xf32>
    %c0_45 = arith.constant 0 : index
    %c0_46 = arith.constant 0 : index
    %c0_47 = arith.constant 0 : index
    %161 = vector.load %arg5[%c0_45, %c0_46, %c0_47] : memref<1x8x128xf32, #tpu.memory_space<vmem>>, vector<1x8x128xf32>
    %162 = vector.shape_cast %161 : vector<1x8x128xf32> to vector<8x128xf32>
    %163 = vector.shape_cast %160 : vector<8x128xf32> to vector<1x8x128xf32>
    tpu.vector_store %arg5[%c0_45, %c0_46, %c0_47], %163 {strides = array<i32>} : memref<1x8x128xf32, #tpu.memory_space<vmem>>, vector<1x8x128xf32>,
    return
  }
  func.func @transform_0(%arg0: i32) -> (i32, i32, i32) {
    %c0_i32 = arith.constant 0 : i32
    %c0_i32_0 = arith.constant 0 : i32
    %c0_i32_1 = arith.constant 0 : i32
    return %arg0, %c0_i32, %c0_i32_0 : i32, i32, i32
  }
  func.func @transform_1(%arg0: i32) -> (i32, i32) {
    %c0_i32 = arith.constant 0 : i32
    %c0_i32_0 = arith.constant 0 : i32
    %c0_i32_1 = arith.constant 0 : i32
    return %c0_i32, %c0_i32_0 : i32, i32
  }
  func.func @transform_2(%arg0: i32) -> (i32, i32) {
    %c0_i32 = arith.constant 0 : i32
    %c0_i32_0 = arith.constant 0 : i32
    %c0_i32_1 = arith.constant 0 : i32
    return %c0_i32, %c0_i32_0 : i32, i32
  }
  func.func @transform_3(%arg0: i32) -> (i32, i32) {
    %c0_i32 = arith.constant 0 : i32
    %c0_i32_0 = arith.constant 0 : i32
    %c0_i32_1 = arith.constant 0 : i32
    return %c0_i32, %c0_i32_0 : i32, i32
  }
  func.func @transform_4(%arg0: i32) -> (i32, i32, i32) {
    %c0_i32 = arith.constant 0 : i32
    %c0_i32_0 = arith.constant 0 : i32
    %c0_i32_1 = arith.constant 0 : i32
    return %arg0, %c0_i32, %c0_i32_0 : i32, i32, i32
  }
}

</mosaic_0001>

<bundles_post_ra>
// kernel: sotax_forward_seq.1
= control target key start
LH: loop header
LB: loop body
LE: loop exit
PB: predicated region body
PF: predicated region fallthrough
CT: control target
= control target key end

     0   :  { %s890_s15 = smov 0   ;;  %s1245_s0 = inlined_call_operand.vmem [shape: f32[5,56,128], index: 0, kind: input, shape index: {}]   ;;  %s1246_s1 = inlined_call_operand.vmem [shape: f32[8,32], index: 1, kind: input, shape index: {}]   ;;  %s1247_s2 = inlined_call_operand.vmem [shape: f32[576,128], index: 2, kind: input, shape index: {}]   ;;  %s1248_s3 = inlined_call_operand.vmem [shape: f32[8,128], index: 3, kind: input, shape index: {}]   ;;  %s1249_s4 = inlined_call_operand.vmem [shape: f32[5,8,128], index: 4, kind: output, shape index: {}]  }
   0x1 LB: > { %s776_s16 = sadd.s32 4294967295, %s851_s15   ;;  %p780_p0 = scmp.ge.s32.totalorder %s851_s15, 1  ;;  %s851_s15 = sphi %s890_s15, %s14_s15  }
   0x2   : > { %p162_p1 = scmp.lt.s32.totalorder %s851_s15, 6 }
   0x4   : > { %p163_p2 = pnand %p780_p0, %p162_p1 }
   0x5   : > { %p187_p3 = scmp.lt.s32.totalorder (!%p163_p2), %s776_s16, 4  ;;  %p783_p4 = scmp.ne.s32.totalorder (!%p163_p2), %s776_s16, 0 }
   0x6   : > { %166 = sbr.rel (%p163_p2) target bundleno = 1904 (0x770), region = 36 }
   0xb   : > { %s188_s17 = scalar_select %p187_p3, %s776_s16, 4 }
   0xc   : > { %199 = sbr.rel (%p783_p4) target bundleno = 19 (0x13), region = 40 }
   0xd   : > { %s796_s18 = smul.u32 56, %s188_s17  ;;  %s782_s19 = sshll.u32 %s188_s17, 3 }
   0xe   : > { %s901_s22 = scalar_lea.vmem %s1249_s4, %s782_s19 }
   0xf   : > { %s906_s25 = scalar_lea.vmem %s1245_s0, %s796_s18 }
  0x11   : > { %v200_v0 = vld [vmem:[%s1246_s1] sm:$0xff]  ;;  %vm201_vm0 = vcmask 261120  }
  0x12   : > { %202 = vst.msk [vmem:[#allocation2] sm:$0xff] %vm201_vm0, %v200_v0 }
  0x13 PF: > { %v226_v1 = vld [vmem:[%s1247_s2 + $0x78] sm:$0xff]  ;;  %v225_v4 = vld [vmem:[%s1247_s2 + $0x70] sm:$0xff]  ;;  %v224_v7 = vld [vmem:[%s1247_s2 + $0x68] sm:$0xff]  ;;  %s853_s11 = smov 96   ;;  %vm347_vm1 = vcmask 130048   ;;  %vm356_vm2 = vcmask 15360  }
  0x14   : > { %v264_v2 = vld [vmem:[%s1247_s2 + $0xf8] sm:$0xff]  ;;  %229 = vmatpush.msra.mxu0 %v226_v1  ;;  %v263_v5 = vld [vmem:[%s1247_s2 + $0xf0] sm:$0xff]  ;;  %v262_v8 = vld [vmem:[%s1247_s2 + $0xe8] sm:$0xff]  ;;  %vm354_vm3 = vcmask 7168   ;;  %vm427_vm4 = vcmask 23552   ;;  %vm429_vm5 = vcmask 31744  }
  0x15   : > { %v305_v3 = vld [vmem:[%s1247_s2 + $0x178] sm:$0xff]  ;;  %267 = vmatpush.msra.mxu1 %v264_v2  ;;  %v304_v6 = vld [vmem:[%s1247_s2 + $0x170] sm:$0xff]  ;;  %v303_v9 = vld [vmem:[%s1247_s2 + $0x168] sm:$0xff]  ;;  %s858_s12 = smov 32   ;;  %s859_s13 = smov 64   ;;  %vm490_vm14 = vcmask 261120  }
  0x16   : > { %308 = vmatpush.msra.mxu2 %v305_v3  ;;  %230 = vmatpush.msra.mxu0 %v225_v4  ;;  %v223_v10 = vld [vmem:[%s1247_s2 + $0x60] sm:$0xff]  ;;  %v222_v13 = vld [vmem:[%s1247_s2 + $0x58] sm:$0xff]  ;;  %v221_v16 = vld [vmem:[%s1247_s2 + $0x50] sm:$0xff]  ;;  %vm492_vm15 = vcmask 523264   ;;  %vm494_vm0 = vcmask 785408   ;;  %s861_s29 = smov 8  }
  0x17   : > { %268 = vmatpush.msra.mxu1 %v263_v5  ;;  %v261_v11 = vld [vmem:[%s1247_s2 + $0xe0] sm:$0xff]  ;;  %v260_v14 = vld [vmem:[%s1247_s2 + $0xd8] sm:$0xff]  ;;  %v259_v17 = vld [vmem:[%s1247_s2 + $0xd0] sm:$0xff]  ;;  %s862_s30 = smov 7   ;;  %s863_s5 = smov 6  }
  0x18   : > { %309 = vmatpush.msra.mxu2 %v304_v6  ;;  %231 = vmatpush.msra.mxu0 %v224_v7  ;;  %v302_v12 = vld [vmem:[%s1247_s2 + $0x160] sm:$0xff]  ;;  %v301_v15 = vld [vmem:[%s1247_s2 + $0x158] sm:$0xff]  ;;  %v300_v18 = vld [vmem:[%s1247_s2 + $0x150] sm:$0xff]  ;;  %s864_s6 = smov 9  }
  0x19   : > { %269 = vmatpush.msra.mxu1 %v262_v8  ;;  %v220_v19 = vld [vmem:[%s1247_s2 + $0x48] sm:$0xff]  ;;  %v219_v22 = vld [vmem:[%s1247_s2 + $0x40] sm:$0xff]  ;;  %v218_v25 = vld [vmem:[%s1247_s2 + $0x38] sm:$0xff] }
  0x1a   : > { %310 = vmatpush.msra.mxu2 %v303_v9  ;;  %232 = vmatpush.msra.mxu0 %v223_v10  ;;  %v258_v20 = vld [vmem:[%s1247_s2 + $0xc8] sm:$0xff]  ;;  %v257_v23 = vld [vmem:[%s1247_s2 + $0xc0] sm:$0xff]  ;;  %v256_v26 = vld [vmem:[%s1247_s2 + $0xb8] sm:$0xff] }
  0x1b   : > { %270 = vmatpush.msra.mxu1 %v261_v11  ;;  %v299_v21 = vld [vmem:[%s1247_s2 + $0x148] sm:$0xff]  ;;  %v298_v24 = vld [vmem:[%s1247_s2 + $0x140] sm:$0xff]  ;;  %v297_v27 = vld [vmem:[%s1247_s2 + $0x138] sm:$0xff] }
  0x1c   : > { %311 = vmatpush.msra.mxu2 %v302_v12  ;;  %233 = vmatpush.msra.mxu0 %v222_v13  ;;  %v217_v28 = vld [vmem:[%s1247_s2 + $0x30] sm:$0xff]  ;;  %v216_v31 = vld [vmem:[%s1247_s2 + $0x28] sm:$0xff]  ;;  %v215_v34 = vld [vmem:[%s1247_s2 + $0x20] sm:$0xff] }
  0x1d   : > { %271 = vmatpush.msra.mxu1 %v260_v14  ;;  %v255_v29 = vld [vmem:[%s1247_s2 + $0xb0] sm:$0xff]  ;;  %v254_v32 = vld [vmem:[%s1247_s2 + $0xa8] sm:$0xff]  ;;  %v253_v35 = vld [vmem:[%s1247_s2 + $0xa0] sm:$0xff] }
  0x1e   : > { %312 = vmatpush.msra.mxu2 %v301_v15  ;;  %234 = vmatpush.msra.mxu0 %v221_v16  ;;  %v296_v30 = vld [vmem:[%s1247_s2 + $0x130] sm:$0xff]  ;;  %v295_v33 = vld [vmem:[%s1247_s2 + $0x128] sm:$0xff]  ;;  %v294_v36 = vld [vmem:[%s1247_s2 + $0x120] sm:$0xff] }
  0x1f   : > { %272 = vmatpush.msra.mxu1 %v259_v17  ;;  %v214_v37 = vld [vmem:[%s1247_s2 + $0x18] sm:$0xff]  ;;  %v213_v40 = vld [vmem:[%s1247_s2 + $0x10] sm:$0xff]  ;;  %v212_v43 = vld [vmem:[%s1247_s2 + $0x8] sm:$0xff] }
  0x20   : > { %313 = vmatpush.msra.mxu2 %v300_v18  ;;  %235 = vmatpush.msra.mxu0 %v220_v19  ;;  %v252_v38 = vld [vmem:[%s1247_s2 + $0x98] sm:$0xff]  ;;  %v251_v41 = vld [vmem:[%s1247_s2 + $0x90] sm:$0xff]  ;;  %v250_v44 = vld [vmem:[%s1247_s2 + $0x88] sm:$0xff] }
  0x21   : > { %273 = vmatpush.msra.mxu1 %v258_v20  ;;  %v293_v39 = vld [vmem:[%s1247_s2 + $0x118] sm:$0xff]  ;;  %v292_v42 = vld [vmem:[%s1247_s2 + $0x110] sm:$0xff]  ;;  %v291_v45 = vld [vmem:[%s1247_s2 + $0x108] sm:$0xff] }
  0x22   : > { %314 = vmatpush.msra.mxu2 %v299_v21  ;;  %236 = vmatpush.msra.mxu0 %v219_v22  ;;  %v211_v46 = vld [vmem:[%s1247_s2] sm:$0xff]  ;;  %v205_v50 = vld [vmem:[%s906_s25 + $0x8] sm:$0xff]  ;;  %v207_v51 = vld [vmem:[%s906_s25 + $0x18] sm:$0xff] }
  0x23   : > { %274 = vmatpush.msra.mxu1 %v257_v23  ;;  %v249_v47 = vld [vmem:[%s1247_s2 + $0x80] sm:$0xff]  ;;  %v206_v52 = vld [vmem:[%s906_s25 + $0x10] sm:$0xff]  ;;  %v209_v54 = vld [vmem:[%s906_s25 + $0x28] sm:$0xff] }
  0x24   : > { %315 = vmatpush.msra.mxu2 %v298_v24  ;;  %237 = vmatpush.msra.mxu0 %v218_v25  ;;  %v290_v48 = vld [vmem:[%s1247_s2 + $0x100] sm:$0xff]  ;;  %v210_v55 = vld [vmem:[%s906_s25 + $0x30] sm:$0xff] }
  0x25   : > { %275 = vmatpush.msra.mxu1 %v256_v26  ;;  %v204_v49 = vld [vmem:[%s906_s25] sm:$0xff] }
  0x26   : > { %316 = vmatpush.msra.mxu2 %v297_v27  ;;  %238 = vmatpush.msra.mxu0 %v217_v28  ;;  %v208_v53 = vld [vmem:[%s906_s25 + $0x20] sm:$0xff] }
  0x27   : > { %276 = vmatpush.msra.mxu1 %v255_v29  ;;  %v824_v56 = vld [vmem:[%s1248_s3] ss:$0 sm:$0xff]  ;;  %v825_v57 = vld [vmem:[%s1248_s3 + $0x1] ss:$0 sm:$0xff]  ;;  %v826_v63 = vld [vmem:[%s1248_s3 + $0x2] ss:$0 sm:$0xff] }
  0x28   : > { %317 = vmatpush.msra.mxu2 %v296_v30  ;;  %239 = vmatpush.msra.mxu0 %v216_v31 }
  0x29   : > { %277 = vmatpush.msra.mxu1 %v254_v32 }
  0x2a   : > { %318 = vmatpush.msra.mxu2 %v295_v33  ;;  %240 = vmatpush.msra.mxu0 %v215_v34 }
  0x2b   : > { %278 = vmatpush.msra.mxu1 %v253_v35 }
  0x2c   : > { %319 = vmatpush.msra.mxu2 %v294_v36  ;;  %241 = vmatpush.msra.mxu0 %v214_v37 }
  0x2d   : > { %279 = vmatpush.msra.mxu1 %v252_v38 }
  0x2e   : > { %320 = vmatpush.msra.mxu2 %v293_v39  ;;  %242 = vmatpush.msra.mxu0 %v213_v40 }
  0x2f   : > { %280 = vmatpush.msra.mxu1 %v251_v41 }
  0x30   : > { %321 = vmatpush.msra.mxu2 %v292_v42  ;;  %243 = vmatpush.msra.mxu0 %v212_v43 }
  0x31   : > { %281 = vmatpush.msra.mxu1 %v250_v44 }
  0x32   : > { %322 = vmatpush.msra.mxu2 %v291_v45  ;;  %244 = vmatpush.msra.mxu0 %v211_v46 }
  0x33   : > { %282 = vmatpush.msra.mxu1 %v249_v47  ;;  %245 = vmatmul.f32.vlgmr.msra.gmra.mxu0 %v204_v49  ;;  %v854_v49 = vmov 0  }
  0x34   : > { %323 = vmatpush.msra.mxu2 %v290_v48  ;;  %283 = vmatmul.f32.vlgmr.msra.gmra.mxu1 %v205_v50  ;;  %v855_v50 = vmov 2  }
  0x35   : > { %324 = vmatmul.f32.vlgmr.msra.gmra.mxu2 %v207_v51  ;;  %818 = vset.pattern.permute.xlu1 %v854_v49 }
  0x36   : > { %817 = vset.pattern.permute.xlu0 %v854_v49  ;;  %820 = vset.pattern.permute.xlu2 %v855_v50  ;;  %v497_v49 = vld [vmem:[%s1247_s2 + $0x188] sm:$0xff]  ;;  %v496_v50 = vld [vmem:[%s1247_s2 + $0x180] sm:$0xff] }
  0x3c   : > { %286 = vmatmul.f32.gmra.mxu1 %v206_v52 }
  0x3d   : > { %327 = vmatmul.f32.gmra.mxu2 %v208_v53 }
  0x45   : > { %330 = vmatmul.f32.gmra.mxu2 %v209_v54 }
  0x4d   : > { %333 = vmatmul.f32.gmra.mxu2 %v210_v55 }
  0xb0   : > { %v246_v58 = vpop.f32.mrf.mxu0 }
  0xb1   : > { %v1068_v59 = vadd.f32 %v824_v56, %v246_v58  ;;  %v284_v60 = vpop.f32.mrf.mxu1 }
  0xb2   : > { %v1070_v61 = vadd.f32 %v825_v57, %v284_v60 }
  0xb4   : > { %v337_v62 = vmul.f32 %v1070_v61, %v1068_v59 }
  0xb6   : > { %341 = vrot.lane.b32.xlu2 %v337_v62, %s853_s11 }
  0xb8   : > { %v325_v0 = vpop.f32.mrf.mxu2 }
  0xb9   : > { %v1078_v1 = vadd.f32 %v826_v63, %v325_v0  ;;  %v287_v2 = vpop.f32.mrf.mxu1 }
  0xba   : > { %v1080_v3 = vadd.f32 %v825_v57, %v287_v2 }
  0xbb   : > { %v393_v4 = vmul.f32 %v1078_v1, %v1068_v59 }
  0xbc   : > { %v338_v5 = vmul.f32 %v1080_v3, %v1068_v59 }
  0xbd   : > { %401 = vrot.lane.b32.xlu0 %v393_v4, %s853_s11 }
  0xbe   : > { %343 = vrot.lane.b32.xlu2 %v338_v5, %s853_s11 }
  0xc0   : > { %v328_v6 = vpop.f32.mrf.mxu2 }
  0xc1   : > { %v1088_v7 = vadd.f32 %v826_v63, %v328_v6 }
  0xc3   : > { %v394_v8 = vmul.f32 %v1088_v7, %v1068_v59 }
  0xc5   : > { %403 = vrot.lane.b32.xlu0 %v394_v8, %s853_s11 }
  0xc8   : > { %v331_v9 = vpop.f32.mrf.mxu2 }
  0xc9   : > { %v1093_v10 = vadd.f32 %v826_v63, %v331_v9 }
  0xcb   : > { %v395_v11 = vmul.f32 %v1093_v10, %v1068_v59 }
  0xcd   : > { %405 = vrot.lane.b32.xlu1 %v395_v11, %s853_s11 }
  0xd0   : > { %v334_v12 = vpop.f32.mrf.mxu2 }
  0xd1   : > { %v1098_v13 = vadd.f32 %v826_v63, %v334_v12 }
  0xd3   : > { %v396_v14 = vmul.f32 %v1098_v13, %v1068_v59 }
  0xd5   : > { %407 = vrot.lane.b32.xlu1 %v396_v14, %s853_s11 }
 0x110   : > { %v342_v17 = vpop.permute.xlu2 %341 }
 0x111   : > { %v348_v20 = vsel %vm347_vm1, %v342_v17, 0.0 }
 0x118   : > { %v344_v21 = vpop.permute.xlu2 %343 }
 0x119   : > { %v351_v24 = vsel %vm347_vm1, %v344_v21, 0.0  ;;  %v1114_v21 = vld [vmem:[#allocation2] sm:$0xff] }
 0x12f   : > { %v402_v15 = vpop.permute.xlu0 %401 }
 0x130   : > { %v413_v16 = vsel %vm347_vm1, %v402_v15, 0.0 }
 0x131   : > { %414 = vadd.xlane.f32.xlu0 %v413_v16 }
 0x137   : > { %v404_v18 = vpop.permute.xlu0 %403 }
 0x138   : > { %v416_v19 = vsel %vm347_vm1, %v404_v18, 0.0  ;;  %v856_v18 = vmov 1  }
 0x139   : > { %417 = vadd.xlane.f32.xlu1 %v416_v19  ;;  %349 = vadd.xlane.f32.xlu0 %v348_v20  ;;  %v857_v19 = vmov 3  }
 0x13f   : > { %v406_v22 = vpop.permute.xlu1 %405 }
 0x140   : > { %v419_v23 = vsel %vm347_vm1, %v406_v22, 0.0 }
 0x141   : > { %420 = vadd.xlane.f32.xlu2 %v419_v23  ;;  %352 = vadd.xlane.f32.xlu1 %v351_v24 }
 0x147   : > { %v408_v25 = vpop.permute.xlu1 %407 }
 0x148   : > { %v422_v26 = vsel %vm347_vm1, %v408_v25, 0.0 }
 0x149   : > { %423 = vadd.xlane.f32.xlu2 %v422_v26 }
 0x1a4   : > { %v415_v27 = vpop.xlane.xlu0 %414 }
 0x1ac   : > { %v418_v28 = vpop.xlane.xlu1 %417  ;;  %v350_v29 = vpop.xlane.xlu0 %349 }
 0x1ad   : > { %v425_v34 = vsel %vm354_vm3, %v415_v27, %v418_v28 }
 0x1b4   : > { %v353_v30 = vpop.xlane.xlu1 %352  ;;  %v421_v31 = vpop.xlane.xlu2 %420 }
 0x1b5   : > { %v355_v32 = vsel %vm354_vm3, %v350_v29, %v353_v30  ;;  %v426_v35 = vsel %vm356_vm2, %v425_v34, %v421_v31 }
 0x1b6   : > { %v357_v33 = vsel %vm356_vm2, %v355_v32, -inf }
 0x1b7   : > { %358 = vmax.xlane.f32.xlu0 %v357_v33 }
 0x1bc   : > { %v424_v36 = vpop.xlane.xlu2 %423 }
 0x1bd   : > { %v428_v37 = vsel %vm427_vm4, %v426_v35, %v424_v36  ;;  %v510_v36 = vld [vmem:[%s1247_s2 + $0x1f0] sm:$0xff] }
 0x1be   : > { %v430_v38 = vsel %vm429_vm5, %v428_v37, -inf }
 0x1bf   : > { %431 = vmax.xlane.f32.xlu2 %v430_v38  ;;  %v508_v38 = vld [vmem:[%s1247_s2 + $0x1e0] sm:$0xff] }
 0x22a   : > { %v359_v39 = vpop.xlane.xlu0 %358 }
 0x22b   : > { %v360_v40 = vsub.f32 %v355_v32, %v359_v39  ;;  %v507_v39 = vld [vmem:[%s1247_s2 + $0x1d8] sm:$0xff] }
 0x22d   : > { %v361_v41 = vmul.f32 1.442695, %v360_v40  ;;  %v506_v40 = vld [vmem:[%s1247_s2 + $0x1d0] sm:$0xff] }
 0x22f   : > { %831 = vpow2.f32 %v361_v41  ;;  %v505_v41 = vld [vmem:[%s1247_s2 + $0x1c8] sm:$0xff] }
 0x232   : > { %v432_v42 = vpop.xlane.xlu2 %431 }
 0x233   : > { %v433_v43 = vsub.f32 %v428_v37, %v432_v42  ;;  %v509_v37 = vld [vmem:[%s1247_s2 + $0x1e8] sm:$0xff]  ;;  %v504_v42 = vld [vmem:[%s1247_s2 + $0x1c0] sm:$0xff] }
 0x235   : > { %v832_v44 = vpop.eup %831  ;;  %v434_v45 = vmul.f32 1.442695, %v433_v43  ;;  %v503_v43 = vld [vmem:[%s1247_s2 + $0x1b8] sm:$0xff] }
 0x236   : > { %v363_v46 = vsel %vm356_vm2, %v832_v44, 0.0 }
 0x237   : > { %833 = vpow2.f32 %v434_v45  ;;  %364 = vadd.xlane.f32.xlu2 %v363_v46  ;;  %v501_v45 = vld [vmem:[%s1247_s2 + $0x1a8] sm:$0xff]  ;;  %v500_v46 = vld [vmem:[%s1247_s2 + $0x1a0] sm:$0xff] }
 0x23d   : > { %v834_v47 = vpop.eup %833 }
 0x23e   : > { %v436_v48 = vsel %vm429_vm5, %v834_v47, 0.0  ;;  %vm710_vm5 = vcmask 48128  }
 0x23f   : > { %437 = vadd.xlane.f32.xlu1 %v436_v48  ;;  %v498_v48 = vld [vmem:[%s1247_s2 + $0x190] sm:$0xff] }
 0x2aa   : > { %v365_v51 = vpop.xlane.xlu2 %364 }
 0x2ab   : > { %835 = vrcp.f32 %v365_v51  ;;  %v377_v56 = vand.u32 2147483648, %v365_v51  ;;  %v375_v58 = vand.u32 2147483647, %v365_v51  ;;  %vm371_vm7 = vweird.f32 %v365_v51 }
 0x2ad   : > { %v378_v63 = vor.u32 1.1754944e-38, %v377_v56  ;;  %vm376_vm9 = vcmp.eq.f32.partialorder %v375_v58, 8.507059e+37 }
 0x2b1   : > { %v836_v52 = vpop.eup %835 }
 0x2b2   : > { %v367_v53 = vmul.f32 %v836_v52, %v365_v51  ;;  %v438_v54 = vpop.xlane.xlu1 %437  ;;  %vm372_vm6 = vweird.f32 %v836_v52 }
 0x2b3   : > { %837 = vrcp.f32 %v438_v54  ;;  %vm373_vm8 = vmor %vm371_vm7, %vm372_vm6  ;;  %v450_v8 = vand.u32 2147483648, %v438_v54  ;;  %v448_v11 = vand.u32 2147483647, %v438_v54  ;;  %vm444_vm11 = vweird.f32 %v438_v54 }
 0x2b4   : > { %v368_v55 = vsub.f32 1.0, %v367_v53  ;;  %vm712_vm6 = vcmask 56320   ;;  %vm714_vm7 = vcmask 64512  }
 0x2b5   : > { %v451_v14 = vor.u32 1.1754944e-38, %v450_v8  ;;  %vm449_vm13 = vcmp.eq.f32.partialorder %v448_v11, 8.507059e+37 }
 0x2b6   : > { %v369_v57 = vmul.f32 %v836_v52, %v368_v55 }
 0x2b8   : > { %v370_v60 = vadd.f32 %v836_v52, %v369_v57  ;;  %v827_v57 = vld [vmem:[%s1248_s3 + $0x3] ss:$0 sm:$0xff] }
 0x2b9   : > { %v838_v62 = vpop.eup %837 }
 0x2ba   : > { %v440_v0 = vmul.f32 %v838_v62, %v438_v54  ;;  %v374_v2 = vsel %vm373_vm8, %v836_v52, %v370_v60  ;;  %vm445_vm10 = vweird.f32 %v838_v62  ;;  %vm716_vm8 = vcmask 72704  }
 0x2bb   : > { %v379_v4 = vsel %vm376_vm9, %v378_v63, %v374_v2  ;;  %vm446_vm12 = vmor %vm444_vm11, %vm445_vm10  ;;  %vm718_vm9 = vcmask 80896  }
 0x2bc   : > { %v441_v5 = vsub.f32 1.0, %v440_v0  ;;  %v380_v6 = vmul.f32 %v832_v44, %v379_v4  ;;  %v502_v44 = vld [vmem:[%s1247_s2 + $0x1b0] sm:$0xff] }
 0x2be   : > { %v442_v9 = vmul.f32 %v838_v62, %v441_v5  ;;  %383 = vperm.xlu1 %818, %v380_v6  }
 0x2c0   : > { %v443_v12 = vadd.f32 %v838_v62, %v442_v9 }
 0x2c2   : > { %v447_v15 = vsel %vm446_vm12, %v838_v62, %v443_v12 }
 0x2c3   : > { %v452_v16 = vsel %vm449_vm13, %v451_v14, %v447_v15 }
 0x2c4   : > { %v453_v17 = vmul.f32 %v834_v47, %v452_v16  ;;  %v499_v47 = vld [vmem:[%s1247_s2 + $0x198] sm:$0xff] }
 0x2c6   : > { %467 = vperm.xlu2 %820, %v453_v17   ;;  %456 = vperm.xlu0 %817, %v453_v17  }
 0x2c7   : > { %819 = vset.pattern.permute.xlu1 %v856_v18 }
 0x2c8   : > { %461 = vperm.xlu1 %819, %v453_v17  }
 0x2ce   : > { %821 = vset.pattern.permute.xlu2 %v856_v18  ;;  %823 = vset.pattern.permute.xlu0 %v857_v19  ;;  %v610_v18 = vmax.f32 %v1088_v7, 0.0 }
 0x2cf   : > { %388 = vperm.xlu2 %821, %v380_v6  }
 0x2d0   : > { %822 = vset.pattern.permute.xlu1 %v857_v19  ;;  %v612_v19 = vmax.f32 %v1098_v13, 0.0 }
 0x2d1   : > { %473 = vperm.xlu1 %822, %v453_v17  }
 0x2d9   : > { %487 = vrot.lane.b32.xlu1 %v1114_v21, %s853_s11 }
 0x320   : > { %v468_v20 = vpop.permute.xlu2 %467 }
 0x321   : > { %v470_v32 = vmul.f32 %v468_v20, %v1093_v10  ;;  %v616_v20 = vld [vmem:[%s1247_s2 + $0x238] sm:$0xff] }
 0x329   : > { %v389_v22 = vpop.permute.xlu2 %388 }
 0x32a   : > { %v391_v24 = vmul.f32 %v389_v22, %v1080_v3 }
 0x330   : > { %v384_v23 = vpop.permute.xlu1 %383 }
 0x331   : > { %v386_v25 = vmul.f32 %v384_v23, %v1070_v61  ;;  %v511_v61 = vld [vmem:[%s1247_s2 + $0x1f8] sm:$0xff] }
 0x332   : > { %514 = vmatpush.msra.mxu3 %v511_v61 }
 0x333   : > { %v392_v26 = vadd.f32 %v391_v24, %v386_v25 }
 0x334   : > { %515 = vmatpush.msra.mxu3 %v510_v36 }
 0x335   : > { %479 = vrot.lane.b32.xlu2 %v392_v26, %s858_s12  ;;  %v611_v26 = vmax.f32 %v1093_v10, 0.0 }
 0x336   : > { %516 = vmatpush.msra.mxu3 %v509_v37 }
 0x338   : > { %v457_v27 = vpop.permute.xlu0 %456  ;;  %517 = vmatpush.msra.mxu3 %v508_v38 }
 0x339   : > { %v459_v29 = vmul.f32 %v457_v27, %v1078_v1  ;;  %v609_v27 = vmax.f32 %v1078_v1, 0.0  ;;  %v580_v1 = vld [vmem:[%s1247_s2 + $0x200] sm:$0xff] }
 0x33a   : > { %v462_v28 = vpop.permute.xlu1 %461  ;;  %518 = vmatpush.msra.mxu3 %v507_v39  ;;  %v828_v39 = vld [vmem:[%s1248_s3 + $0x4] ss:$0 sm:$0xff] }
 0x33b   : > { %v464_v30 = vmul.f32 %v462_v28, %v1088_v7  ;;  %v614_v7 = vld [vmem:[%s1247_s2 + $0x228] sm:$0xff]  ;;  %v583_v28 = vld [vmem:[%s1247_s2 + $0x218] sm:$0xff] }
 0x33c   : > { %519 = vmatpush.msra.mxu3 %v506_v40  ;;  %598 = vmatpush.msrb.mxu0 %v583_v28 }
 0x33d   : > { %v465_v31 = vadd.f32 %v464_v30, %v459_v29  ;;  %v582_v29 = vld [vmem:[%s1247_s2 + $0x210] sm:$0xff]  ;;  %v581_v30 = vld [vmem:[%s1247_s2 + $0x208] sm:$0xff] }
 0x33e   : > { %520 = vmatpush.msra.mxu3 %v505_v41  ;;  %599 = vmatpush.msrb.mxu0 %v582_v29 }
 0x33f   : > { %v471_v34 = vadd.f32 %v470_v32, %v465_v31 }
 0x340   : > { %521 = vmatpush.msra.mxu3 %v504_v42  ;;  %600 = vmatpush.msrb.mxu0 %v581_v30 }
 0x342   : > { %522 = vmatpush.msra.mxu3 %v503_v43  ;;  %601 = vmatpush.msrb.mxu0 %v580_v1 }
 0x343   : > { %v474_v33 = vpop.permute.xlu1 %473 }
 0x344   : > { %v476_v35 = vmul.f32 %v474_v33, %v1098_v13  ;;  %523 = vmatpush.msra.mxu3 %v502_v44  ;;  %v613_v13 = vld [vmem:[%s1247_s2 + $0x220] sm:$0xff]  ;;  %649 = vmatpush.msra.mxu0 %v616_v20 }
 0x346   : > { %v477_v3 = vadd.f32 %v476_v35, %v471_v34  ;;  %524 = vmatpush.msra.mxu3 %v501_v45  ;;  %v829_v45 = vld [vmem:[%s1248_s3 + $0x5] ss:$0 sm:$0xff] }
 0x348   : > { %483 = vrot.lane.b32.xlu0 %v477_v3, %s859_s13  ;;  %525 = vmatpush.msra.mxu3 %v500_v46 }
 0x34a   : > { %526 = vmatpush.msra.mxu3 %v499_v47 }
 0x34b   : > { %v488_v52 = vpop.permute.xlu1 %487 }
 0x34c   : > { %527 = vmatpush.msra.mxu3 %v498_v48 }
 0x34e   : > { %528 = vmatpush.msra.mxu3 %v497_v49 }
 0x350   : > { %529 = vmatpush.msra.mxu3 %v496_v50 }
 0x352   : > { %792 = vmatpush.msrb.mxu3 %v616_v20 }
 0x38f   : > { %v480_v51 = vpop.permute.xlu2 %479 }
 0x390   : > { %v491_v53 = vsel %vm490_vm14, %v1068_v59, %v480_v51 }
 0x3ba   : > { %v484_v54 = vpop.permute.xlu0 %483 }
 0x3bb   : > { %v493_v55 = vsel %vm492_vm15, %v491_v53, %v484_v54 }
 0x3bc   : > { %v495_v56 = vsel %vm494_vm0, %v493_v55, %v488_v52 }
 0x3bd   : > { %530 = vmatmul.f32.vlgmr.msra.gmra.mxu3 %v495_v56 }
 0x440   : > { %v531_v58 = vpop.f32.mrf.mxu3 }
 0x441   : > { %v532_v60 = vadd.f32 %v827_v57, %v531_v58  ;;  %v830_v58 = vld [vmem:[%s1248_s3 + $0x6] ss:$0 sm:$0xff] }
 0x443   : > { %554 = vrot.lane.b32.xlu2 %v532_v60, %s858_s12  ;;  %v784_v62 = vmul.f32 -1.442695, %v532_v60 }
 0x445   : > { %839 = vpow2.f32 %v784_v62 }
 0x44b   : > { %570 = vrot.lane.b32.xlu2 %v1114_v21, %s858_s12  ;;  %v840_v63 = vpop.eup %839  ;;  %s860_s12 = smov 80   ;;  %v615_v21 = vld [vmem:[%s1247_s2 + $0x230] sm:$0xff] }
 0x44c   : > { %v537_v0 = vadd.f32 1.0, %v840_v63  ;;  %793 = vmatpush.msrb.mxu3 %v615_v21  ;;  %650 = vmatpush.msra.mxu0 %v615_v21 }
 0x44e   : > { %841 = vrcp.f32 %v537_v0  ;;  %v549_v9 = vand.u32 2147483648, %v537_v0  ;;  %vm543_vm2 = vweird.f32 %v537_v0  ;;  %v547_v11 = vand.u32 2147483647, %v537_v0  ;;  %794 = vmatpush.msrb.mxu3 %v614_v7  ;;  %651 = vmatpush.msra.mxu0 %v614_v7 }
 0x450   : > { %v550_v14 = vor.u32 1.1754944e-38, %v549_v9  ;;  %vm548_vm4 = vcmp.eq.f32.partialorder %v547_v11, 8.507059e+37  ;;  %795 = vmatpush.msrb.mxu3 %v613_v13  ;;  %652 = vmatpush.msra.mxu0 %v613_v13 }
 0x454   : > { %v842_v2 = vpop.eup %841 }
 0x455   : > { %v539_v4 = vmul.f32 %v842_v2, %v537_v0  ;;  %vm544_vm1 = vweird.f32 %v842_v2 }
 0x456   : > { %vm545_vm3 = vmor %vm543_vm2, %vm544_vm1 }
 0x457   : > { %v540_v5 = vsub.f32 1.0, %v539_v4 }
 0x459   : > { %v541_v6 = vmul.f32 %v842_v2, %v540_v5 }
 0x45b   : > { %v542_v8 = vadd.f32 %v842_v2, %v541_v6 }
 0x45d   : > { %v546_v12 = vsel %vm545_vm3, %v842_v2, %v542_v8 }
 0x45e   : > { %v551_v16 = vsel %vm548_vm4, %v550_v14, %v546_v12 }
 0x45f   : > { %v564_v31 = vsub.f32 1.0, %v551_v16 }
 0x49d   : > { %v555_v15 = vpop.permute.xlu2 %554 }
 0x49e   : > { %v557_v17 = vmul.f32 %v555_v15, %v551_v16 }
 0x4a0   : > { %559 = vrot.lane.b32.xlu0 %v557_v17, %s859_s13 }
 0x4a5   : > { %v571_v10 = vpop.permute.xlu2 %570 }
 0x4a6   : > { %v573_v33 = vmul.f32 %v571_v10, %v551_v16 }
 0x4a8   : > { %623 = vrot.lane.b32.xlu0 %v610_v18, %s860_s12 }
 0x4b0   : > { %627 = vrot.lane.b32.xlu0 %v612_v19, %s860_s12 }
 0x512   : > { %v560_v22 = vpop.permute.xlu0 %559 }
 0x513   : > { %v562_v23 = vadd.f32 %v560_v22, %v532_v60 }
 0x515   : > { %843 = vtanh.f32 %v562_v23 }
 0x51a   : > { %v624_v24 = vpop.permute.xlu0 %623 }
 0x51b   : > { %v844_v25 = vpop.eup %843  ;;  %787 = vmatmul.msk.f32.vlgmr.msrb.gmra.mxu3 %vm490_vm14, %v624_v24 }
 0x51c   : > { %566 = vrot.lane.b32.xlu1 %v844_v25, %s853_s11 }
 0x522   : > { %v628_v61 = vpop.permute.xlu0 %627 }
 0x524   : > { %625 = vrot.lane.b32.xlu1 %v611_v26, %s860_s12 }
 0x52c   : > { %621 = vrot.lane.b32.xlu1 %v609_v27, %s860_s12 }
 0x58e   : > { %v567_v32 = vpop.permute.xlu1 %566 }
 0x58f   : > { %v569_v34 = vmul.f32 %v567_v32, %v564_v31 }
 0x591   : > { %v1218_v35 = vadd.f32 %v573_v33, %v569_v34 }
 0x593   : > { %576 = vrot.lane.b32.xlu2 %v1218_v35, %s853_s11 }
 0x596   : > { %v626_v3 = vpop.permute.xlu1 %625 }
 0x597   : > { %788 = vmatmul.msk.f32.gmra.mxu3 %vm490_vm14, %v626_v3 }
 0x59e   : > { %v622_v37 = vpop.permute.xlu1 %621  ;;  %v657_v38 = vpop.f32.mrf.mxu3 }
 0x59f   : > { %789 = vmatmul.msk.f32.gmra.mxu3 %vm490_vm14, %v628_v61 }
 0x5ed   : > { %v577_v36 = vpop.permute.xlu2 %576 }
 0x5ee   : > { %579 = vst.msk [vmem:[#allocation2] sm:$0xff] %vm490_vm14, %v577_v36  ;;  %785 = vmatmul.msk.f32.vlgmr.msrb.gmra.mxu0 %vm490_vm14, %v577_v36 }
 0x5f6   : > { %786 = vmatmul.msk.f32.vlgmr.msra.gmra.mxu0 %vm490_vm14, %v622_v37 }
 0x61a   : > { %v660_v42 = vpop.f32.mrf.mxu3 }
 0x622   : > { %v663_v54 = vpop.f32.mrf.mxu3 }
 0x66b   : > { %v603_v40 = vpop.f32.mrf.mxu0 }
 0x66c   : > { %v604_v41 = vadd.f32 %v603_v40, %v1068_v59 }
 0x66e   : > { %v608_v43 = vadd.f32 %v828_v39, %v604_v41 }
 0x670   : > { %v661_v44 = vadd.f32 %v660_v42, %v608_v43  ;;  %v658_v46 = vadd.f32 %v657_v38, %v608_v43  ;;  %v664_v59 = vadd.f32 %v663_v54, %v608_v43 }
 0x672   : > { %v668_v47 = vmax.f32 %v661_v44, 0.0  ;;  %v667_v48 = vmax.f32 %v658_v46, 0.0  ;;  %v669_v56 = vmax.f32 %v664_v59, 0.0 }
 0x673   : > { %v654_v49 = vpop.f32.mrf.mxu0 }
 0x674   : > { %v655_v50 = vadd.f32 %v654_v49, %v608_v43  ;;  %v674_v51 = vmul.f32 %v829_v45, %v668_v47  ;;  %v673_v52 = vmul.f32 %v829_v45, %v667_v48  ;;  %v675_v57 = vmul.f32 %v829_v45, %v669_v56 }
 0x676   : > { %v666_v53 = vmax.f32 %v655_v50, 0.0  ;;  %680 = vadd.xlane.f32.xlu1 %v674_v51  ;;  %678 = vadd.xlane.f32.xlu0 %v673_v52 }
 0x678   : > { %v672_v55 = vmul.f32 %v829_v45, %v666_v53 }
 0x67a   : > { %676 = vadd.xlane.f32.xlu2 %v672_v55 }
 0x682   : > { %682 = vadd.xlane.f32.xlu2 %v675_v57 }
 0x68a   : > { %691 = vrot.lane.b32.xlu0 %v608_v43, %s860_s12 }
 0x6e9   : > { %v681_v60 = vpop.xlane.xlu1 %680  ;;  %v679_v62 = vpop.xlane.xlu0 %678 }
 0x6ea   : > { %v688_v63 = vadd.f32 %v830_v58, %v681_v60  ;;  %v687_v0 = vadd.f32 %v830_v58, %v679_v62 }
 0x6ec   : > { %703 = vrot.lane.b32.xlu0 %v688_v63, %s861_s29  ;;  %699 = vrot.lane.b32.xlu2 %v687_v0, %s862_s30 }
 0x6ed   : > { %v677_v2 = vpop.xlane.xlu2 %676 }
 0x6ee   : > { %v686_v4 = vadd.f32 %v830_v58, %v677_v2 }
 0x6f0   : > { %695 = vrot.lane.b32.xlu1 %v686_v4, %s863_s5 }
 0x6f5   : > { %v683_v5 = vpop.xlane.xlu2 %682 }
 0x6f6   : > { %v689_v6 = vadd.f32 %v830_v58, %v683_v5 }
 0x6f8   : > { %707 = vrot.lane.b32.xlu1 %v689_v6, %s864_s6 }
 0x6fc   : > { %v692_v8 = vpop.permute.xlu0 %691 }
 0x746   : > { %v700_v12 = vpop.permute.xlu2 %699 }
 0x75e   : > { %v704_v15 = vpop.permute.xlu0 %703 }
 0x762   : > { %v696_v9 = vpop.permute.xlu1 %695 }
 0x763   : > { %v711_v11 = vsel %vm710_vm5, %v692_v8, %v696_v9 }
 0x764   : > { %v713_v14 = vsel %vm712_vm6, %v711_v11, %v700_v12 }
 0x765   : > { %v715_v17 = vsel %vm714_vm7, %v713_v14, %v704_v15 }
 0x76a   : > { %v708_v16 = vpop.permute.xlu1 %707 }
 0x76b   : > { %v717_v18 = vsel %vm716_vm8, %v715_v17, %v708_v16 }
 0x76c   : > { %v719_v19 = vsel %vm718_vm9, %v717_v18, 0.0 }
 0x76d   : > { %v720_v20 = vsel %vm490_vm14, %v719_v19, %v1218_v35 }
 0x76e   : > { %v721_v21 = vsel %vm492_vm15, %v720_v20, 0.0 }
 0x76f   : > { %722 = vst [vmem:[%s901_s22] sm:$0xff] %v721_v21 }
 0x770 PF: > { %s14_s15 = sadd.s32 1, %s851_s15  }
 0x771   : > { %p11_p5 = scmp.ge.s32.totalorder %s14_s15, 7  }
 0x773   :  { %13 = sbr.rel (!%p11_p5) target bundleno = 1 (0x1), region = 70 }

</bundles_post_ra>
